<compile_context>
chip_gen: v6e
topology: v6e:2x2x1
jax: 0.10.0
libtpu: 0.0.40
codegen_flags: <defaults>
</compile_context>

<pallas_src>
import jax
import jax.numpy as jnp
from jax.experimental import pallas as pl
from jax.experimental.pallas import tpu as pltpu

NUM_INPUT = 50 * 40        # 2000
NUM_NEURON = 23
M_PAD = 128                # lane-dense padded output width
TM_MAX = 1024              # max batch-tile rows (f32 x tile 8 MB, 2x buffered 16.4 MB)
VMEM_LIMIT_BYTES = 40 * 1024 * 1024   # x(2x) + W(2x) + out(2x) ~18.5 MB + headroom
PAD_BIAS = -1.0e30         # padded bias cols -> exp(acc + PAD_BIAS) == 0.0 exactly


def _round_up(v, m):
    return ((v + m - 1) // m) * m


def _choose_tm(n):
    """Batch tile: multiple of 16 (packed-sublane friendly), <= TM_MAX, and an
    even number of near-equal tiles so v7x's two TensorCores get balanced work
    when the batch grid axis is sharded ("parallel")."""
    pairs = max(1, -(-n // (2 * TM_MAX)))     # ceil(n / (2*TM_MAX))
    tm = -(-n // (2 * pairs))                 # cdiv(n, 2*pairs)  <= TM_MAX
    return max(16, _round_up(tm, 16))


def vln_kernel(x_ref, w_ref, b_ref, o_ref):
    # Cast x -> bf16 in-kernel (avoids a separate HBM cast pass in the wrapper);
    # bf16 MXU matmul with f32 accumulation, then bias add + exp in f32.
    xb = x_ref[...].astype(jnp.bfloat16)
    acc = jnp.dot(xb, w_ref[...], preferred_element_type=jnp.float32)
    o_ref[...] = jnp.exp(acc + b_ref[...])


def _vln_pallas(x, w_pad, b_pad):
    n, k = x.shape
    tm = _choose_tm(n)
    grid = (pl.cdiv(n, tm),)
    cost = pl.CostEstimate(
        flops=2 * n * k * M_PAD,
        transcendentals=n * M_PAD,
        bytes_accessed=(n * k * x.dtype.itemsize          # x read (f32 or bf16)
                        + w_pad.size * w_pad.dtype.itemsize
                        + b_pad.size * b_pad.dtype.itemsize
                        + n * M_PAD * 4),                  # f32 output write
    )
    return pl.pallas_call(
        vln_kernel,
        out_shape=jax.ShapeDtypeStruct((n, M_PAD), jnp.float32),
        grid=grid,
        in_specs=[
            # x: tiled over batch, full K (full-array dim -> exempt from /128 rule)
            pl.BlockSpec((tm, k), lambda i: (i, 0)),
            # W, b: constant block index -> stay resident in VMEM across tiles
            pl.BlockSpec((k, M_PAD), lambda i: (0, 0)),
            pl.BlockSpec((1, M_PAD), lambda i: (0, 0)),
        ],
        out_specs=pl.BlockSpec((tm, M_PAD), lambda i: (i, 0)),
        compiler_params=pltpu.CompilerParams(
            dimension_semantics=("parallel",),
            vmem_limit_bytes=VMEM_LIMIT_BYTES),
        cost_estimate=cost,
    )(x, w_pad, b_pad)


def prepare_weights(w, b):
    """Transpose + pad PyTorch-style (out, in) weights to a lane-dense
    (in=2000, 128) bf16 slab + (1, 128) f32 bias. Padding weight columns are 0
    and padding bias entries are -1e30, so padded output columns are exactly 0.
    Call once and cache for the deterministic (sample_flag=False) path."""
    w_pad = (jnp.zeros((NUM_INPUT, M_PAD), jnp.bfloat16)
             .at[:, :NUM_NEURON].set(w.T.astype(jnp.bfloat16)))
    b_pad = (jnp.full((1, M_PAD), PAD_BIAS, jnp.float32)
             .at[0, :NUM_NEURON].set(b.astype(jnp.float32)))
    return w_pad, b_pad


def variational_ln_forward(x, params, sample_flag=False, key=None,
                           prepared_mean=None, return_padded=False):
    """Forward pass of VariationalLN.

    x: any shape flattening to (-1, 2000) (e.g. (B, 50, 40)), like x.view(-1, 2000).
    prepared_mean: optional cached prepare_weights(w_mu, b_mu) for sample_flag=False.
    return_padded: return the lane-dense (N, 128) slab (cols 23..127 are 0.0)
       and skip the extra slice pass over the output.
    """
    xf = jnp.reshape(x, (-1, NUM_INPUT))   # no dtype cast here; kernel casts to bf16

    if sample_flag:
        assert key is not None
        kw, kb = jax.random.split(key)
        sigma_w = jax.nn.softplus(params["w_rho"])
        sigma_b = jax.nn.softplus(params["b_rho"])
        w = params["w_mu"] + sigma_w * jax.random.normal(
            kw, params["w_mu"].shape, params["w_mu"].dtype)
        b = params["b_mu"] + sigma_b * jax.random.normal(
            kb, params["b_mu"].shape, params["b_mu"].dtype)
        w_pad, b_pad = prepare_weights(w, b)
    else:
        if prepared_mean is not None:
            w_pad, b_pad = prepared_mean
        else:
            w_pad, b_pad = prepare_weights(params["w_mu"], params["b_mu"])

    out = _vln_pallas(xf, w_pad, b_pad)
    if return_padded:
        return out
    return out[:, :NUM_NEURON]


def init_params(key):
    """Deterministic init matching VariationalLinear(2000, 23) parameter shapes."""
    k1, k2 = jax.random.split(key)
    bound = 1.0 / jnp.sqrt(jnp.float32(NUM_INPUT))
    w_mu = jax.random.uniform(k1, (NUM_NEURON, NUM_INPUT), jnp.float32,
                              minval=-bound, maxval=bound)
    b_mu = jax.random.uniform(k2, (NUM_NEURON,), jnp.float32,
                              minval=-bound, maxval=bound)
    w_rho = jnp.full((NUM_NEURON, NUM_INPUT), -5.0, jnp.float32)
    b_rho = jnp.full((NUM_NEURON,), -5.0, jnp.float32)
    return {"w_mu": w_mu, "w_rho": w_rho, "b_mu": b_mu, "b_rho": b_rho}


if __name__ == "__main__":
    root = jax.random.PRNGKey(0)
    k_params, k_x, k_x2, k_sample = jax.random.split(root, 4)

    params = init_params(k_params)
    prepared_mean = prepare_weights(params["w_mu"], params["b_mu"])  # cache once

    # Small batch of "50x40 images" -> flattened to (2, 2000) inside forward.
    x = jax.random.normal(k_x, (2, 50, 40), jnp.float32)
    y_det = jax.block_until_ready(
        variational_ln_forward(x, params, sample_flag=False,
                               prepared_mean=prepared_mean))
    y_smp = jax.block_until_ready(
        variational_ln_forward(x, params, sample_flag=True, key=k_sample))
    y_pad = jax.block_until_ready(
        variational_ln_forward(x, params, sample_flag=False,
                               prepared_mean=prepared_mean, return_padded=True))

    # Larger batch: multiple balanced grid tiles (600 -> 2 tiles of 304/296).
    x_big = jax.random.normal(k_x2, (600, 50, 40), jnp.float32)
    y_big = jax.block_until_ready(
        variational_ln_forward(x_big, params, sample_flag=False,
                               prepared_mean=prepared_mean))

    # Plain-JAX f32 reference (deterministic path). bf16 matmul operands ->
    # loosened tolerance vs. the f32 reference.
    def ref_fn(xi):
        xr = jnp.reshape(xi, (-1, NUM_INPUT)).astype(jnp.float32)
        return jnp.exp(xr @ params["w_mu"].T + params["b_mu"])

    assert y_det.shape == (2, NUM_NEURON)
    assert y_smp.shape == (2, NUM_NEURON)
    assert y_big.shape == (600, NUM_NEURON)
    assert y_pad.shape == (2, M_PAD)
    assert bool(jnp.all(jnp.isfinite(y_det))) and bool(jnp.all(jnp.isfinite(y_smp)))
    assert bool(jnp.all(y_pad[:, NUM_NEURON:] == 0.0))          # padding cols are 0
    assert jnp.allclose(y_pad[:, :NUM_NEURON], y_det)
    assert jnp.allclose(y_det, ref_fn(x), rtol=5e-2, atol=1e-3)
    assert jnp.allclose(y_big, ref_fn(x_big), rtol=5e-2, atol=1e-3)

    print("KERNEL_OK")
</pallas_src>

<mosaic_0001>
module attributes {stable_mosaic.version = 11 : i64} {
  func.func @vln_kernel(%arg0: i32, %arg1: memref<16x2000xf32, #tpu.memory_space<vmem>>, %arg2: memref<2000x128xbf16, #tpu.memory_space<vmem>>, %arg3: memref<1x128xf32, #tpu.memory_space<vmem>>, %arg4: memref<16x128xf32, #tpu.memory_space<vmem>>) attributes {dimension_semantics = [#tpu.dimension_semantics<parallel>], iteration_bounds = array<i64: 1>, scalar_prefetch = 0 : i64, scratch_operands = 0 : i64, tpu.core_type = #tpu.core_type<tc>, window_params = [{transform_indices = @transform_0, window_bounds = array<i64: 16, 2000>}, {pipeline_mode = #tpu.pipeline_mode<synchronous>, transform_indices = @transform_1, window_bounds = array<i64: 2000, 128>}, {pipeline_mode = #tpu.pipeline_mode<synchronous>, transform_indices = @transform_2, window_bounds = array<i64: 1, 128>}, {transform_indices = @transform_3, window_bounds = array<i64: 16, 128>}]} {
    %c0 = arith.constant 0 : index
    %c0_0 = arith.constant 0 : index
    %0 = vector.load %arg1[%c0, %c0_0] : memref<16x2000xf32, #tpu.memory_space<vmem>>, vector<16x2000xf32>
    %1 = arith.truncf %0 : vector<16x2000xf32> to vector<16x2000xbf16>
    %c0_1 = arith.constant 0 : index
    %c0_2 = arith.constant 0 : index
    %2 = vector.load %arg2[%c0_1, %c0_2] : memref<2000x128xbf16, #tpu.memory_space<vmem>>, vector<2000x128xbf16>
    %cst = arith.constant dense<0.000000e+00> : vector<16x128xf32>
    %3 = tpu.matmul %1, %2, %cst {dimension_numbers = #tpu.dot_dimension_numbers<[1], [0], [0], [1], [0, 0, 1, 1], [], []>} : vector<16x2000xbf16>, vector<2000x128xbf16>, vector<16x128xf32> -> vector<16x128xf32>
    %c0_3 = arith.constant 0 : index
    %c0_4 = arith.constant 0 : index
    %4 = vector.load %arg3[%c0_3, %c0_4] : memref<1x128xf32, #tpu.memory_space<vmem>>, vector<1x128xf32>
    %5 = vector.broadcast %4 : vector<1x128xf32> to vector<16x128xf32>
    %6 = arith.addf %3, %5 : vector<16x128xf32>
    %7 = math.exp %6 : vector<16x128xf32>
    %c0_5 = arith.constant 0 : index
    %c0_6 = arith.constant 0 : index
    %8 = vector.load %arg4[%c0_5, %c0_6] : memref<16x128xf32, #tpu.memory_space<vmem>>, vector<16x128xf32>
    tpu.vector_store %arg4[%c0_5, %c0_6], %7 {strides = array<i32>} : memref<16x128xf32, #tpu.memory_space<vmem>>, vector<16x128xf32>,
    return
  }
  func.func @transform_0(%arg0: i32) -> (i32, i32) {
    %c0_i32 = arith.constant 0 : i32
    %c0_i32_0 = arith.constant 0 : i32
    return %arg0, %c0_i32 : i32, i32
  }
  func.func @transform_1(%arg0: i32) -> (i32, i32) {
    %c0_i32 = arith.constant 0 : i32
    %c0_i32_0 = arith.constant 0 : i32
    %c0_i32_1 = arith.constant 0 : i32
    return %c0_i32, %c0_i32_0 : i32, i32
  }
  func.func @transform_2(%arg0: i32) -> (i32, i32) {
    %c0_i32 = arith.constant 0 : i32
    %c0_i32_0 = arith.constant 0 : i32
    %c0_i32_1 = arith.constant 0 : i32
    return %c0_i32, %c0_i32_0 : i32, i32
  }
  func.func @transform_3(%arg0: i32) -> (i32, i32) {
    %c0_i32 = arith.constant 0 : i32
    %c0_i32_0 = arith.constant 0 : i32
    return %arg0, %c0_i32 : i32, i32
  }
}

</mosaic_0001>

<bundles_post_ra>
// kernel: tpu_custom_call.1
= control target key start
LH: loop header
LB: loop body
LE: loop exit
PB: predicated region body
PF: predicated region fallthrough
CT: control target
= control target key end

     0   :  { %8 = vsyncpa [#allocation3], 0  ;;  %s2385_s0 = inlined_call_operand.hbm [shape: f32[2,2000], index: 0, kind: input, shape index: {}]   ;;  %s2386_s1 = inlined_call_operand.hbm [shape: bf16[2000,128], index: 1, kind: input, shape index: {}]   ;;  %s2387_s2 = inlined_call_operand.vmem [shape: f32[1,128], index: 2, kind: input, shape index: {}]   ;;  %s2388_s3 = inlined_call_operand.hbm [shape: f32[2,128], index: 3, kind: output, shape index: {}]  }
   0x1   :  { %9 = vsyncpa [#allocation6], 0 }
   0x2   :  { %10 = vsyncpa [#allocation4], 0 }
   0x3   :  { %15 = vsyncadd [#allocation3], 3584  ;;  %s2293_s12 = smov [#allocation2]  }
   0x4   :  { %s16_s13 = sshll.u32 %s2293_s12, 4  ;;  %s17_s13 = int_to_ptr.vmem [resolvable:$true] %s16_s13 }
   0x5   :  { %s2235_s14 = scalar_lea.vmem %s17_s13, 512  ;;  %s2239_s15 = scalar_lea.vmem %s17_s13, 4096 }
   0x6   :  { %p2236_p0 = scmp.ne.s32.totalorder %s17_s13, %s2235_s14  ;;  %p2240_p1 = scmp.lt.s32.totalorder %s17_s13, %s17_s13 }
   0x7   :  { %p2241_p2 = scmp.lt.s32.totalorder %s2239_s15, %s2235_s14 }
   0x9   :  { %p2242_p3 = por %p2241_p2, %p2240_p1 }
   0xb   :  { %p2243_p4 = pnand %p2242_p3, %p2236_p0 }
   0xd   :  { %2246 = shalt.err (!%p2243_p4)
}
   0xe   :  { %s2294_s16 = smov 512   ;;  %s2295_s17 = smov 32  }
   0xf   :  { %22 = dma.hbm_to_vmem [thread:$0]  %s2385_s0, 512, %s17_s13, [#allocation3], %s2294_s16, %s2294_s16, %s2295_s17  }
  0x10   :  { %s2296_s20 = smov [#allocation5]  }
  0x11   :  { %s28_s21 = sshll.u32 %s2296_s20, 4  ;;  %s29_s21 = int_to_ptr.vmem [resolvable:$true] %s28_s21 }
  0x12   :  { %s2255_s22 = scalar_lea.vmem %s29_s21, 16000  ;;  %p2260_p6 = scmp.lt.s32.totalorder %s29_s21, %s29_s21 }
  0x13   :  { %p2256_p5 = scmp.ne.s32.totalorder %s29_s21, %s2255_s22  ;;  %p2261_p7 = scmp.lt.s32.totalorder %s2255_s22, %s2255_s22 }
  0x15   :  { %p2262_p8 = por %p2261_p7, %p2260_p6 }
  0x17   :  { %p2263_p9 = pnand %p2262_p8, %p2256_p5 }
  0x19   :  { %2266 = shalt.err (!%p2263_p9)
}
  0x1a   :  { %s2297_s23 = smov 64   ;;  %s2298_s24 = smov 4  }
  0x1b   :  { %34 = dma.hbm_to_vmem [thread:$0]  %s2386_s1, 16000, %s29_s21, [#allocation6], %s2297_s23, %s2297_s23, %s2298_s24  }
  0x1c   :  { %2287 = dma.done.wait [#allocation3], 4096  }
  0x1d   :  { %2288 = vsyncadd [#allocation3], 4294963200 }
  0x1e   :  { %2289 = dma.done.wait [#allocation6], 16000  }
  0x1f   :  { %2290 = vsyncadd [#allocation6], 4294951296  ;;  %v2098_v0 = vld [vmem:[#allocation5 + $0x78] sm:$0xff]   ;;  %v2102_v4 = vld [vmem:[#allocation5 + $0x70] sm:$0xff]   ;;  %v2299_v24 = vmov 1983009808   ;;  %v115_v26 = vlaneseq }
  0x20   :  { %v2099_v1 = vld [vmem:[#allocation5 + $0xf8] sm:$0xff]   ;;  %1934 = vmatprep.subr.bf16.mxu0 %v2098_v0  ;;  %v2103_v5 = vld [vmem:[#allocation5 + $0xf0] sm:$0xff]   ;;  %v2106_v8 = vld [vmem:[#allocation5 + $0x68] sm:$0xff]   ;;  %v113_v25 = vunpack.c.l.s4 %v2299_v24  ;;  %vm1451_vm0 = vcmask 654336  }
  0x21   :  { %v2100_v2 = vld [vmem:[#allocation5 + $0x38] sm:$0xff]   ;;  %1956 = vmatprep.subr.bf16.mxu1 %v2099_v1  ;;  %v2104_v6 = vld [vmem:[#allocation5 + $0x30] sm:$0xff]   ;;  %v2107_v9 = vld [vmem:[#allocation5 + $0xe8] sm:$0xff]   ;;  %v116_v32 = vshrl.u32 %v115_v26, 7 }
  0x22   :  { %v2101_v3 = vld [vmem:[#allocation5 + $0xb8] sm:$0xff]   ;;  %1935 = vmatpush3.bf16.msra.mxu0 %v2100_v2  ;;  %v2105_v7 = vld [vmem:[#allocation5 + $0xb0] sm:$0xff]   ;;  %v2108_v10 = vld [vmem:[#allocation5 + $0x28] sm:$0xff]   ;;  %v114_v31 = vunpack.c.0.s8 %v113_v25 }
  0x23   :  { %1957 = vmatpush3.bf16.msra.mxu1 %v2101_v3  ;;  %1936 = vmatprep.subr.bf16.mxu0 %v2102_v4  ;;  %v2109_v11 = vld [vmem:[#allocation5 + $0xa8] sm:$0xff]   ;;  %v2110_v12 = vld [vmem:[#allocation5 + $0x60] sm:$0xff]   ;;  %v2114_v16 = vld [vmem:[#allocation5 + $0x58] sm:$0xff]  }
  0x24   :  { %1958 = vmatprep.subr.bf16.mxu1 %v2103_v5  ;;  %v2111_v13 = vld [vmem:[#allocation5 + $0xe0] sm:$0xff]   ;;  %v2115_v17 = vld [vmem:[#allocation5 + $0xd8] sm:$0xff]   ;;  %v2118_v20 = vld [vmem:[#allocation5 + $0x50] sm:$0xff]   ;;  %v2330_v37 = vsub.s32 %v114_v31, %v116_v32 }
  0x25   :  { %v2112_v14 = vld [vmem:[#allocation5 + $0x20] sm:$0xff]   ;;  %v2116_v18 = vld [vmem:[#allocation5 + $0x18] sm:$0xff]   ;;  %v2119_v21 = vld [vmem:[#allocation5 + $0xd0] sm:$0xff]  }
  0x26   :  { %1937 = vmatpush3.bf16.msra.mxu0 %v2104_v6  ;;  %v2113_v15 = vld [vmem:[#allocation5 + $0xa0] sm:$0xff]   ;;  %v2117_v19 = vld [vmem:[#allocation5 + $0x98] sm:$0xff]   ;;  %v2120_v22 = vld [vmem:[#allocation5 + $0x10] sm:$0xff]  }
  0x27   :  { %1959 = vmatpush3.bf16.msra.mxu1 %v2105_v7  ;;  %1938 = vmatprep.subr.bf16.mxu0 %v2106_v8  ;;  %v2121_v23 = vld [vmem:[#allocation5 + $0x90] sm:$0xff]   ;;  %v2122_v27 = vld [vmem:[#allocation5 + $0x48] sm:$0xff]   ;;  %v2126_v33 = vld [vmem:[#allocation5 + $0x40] sm:$0xff]  }
  0x28   :  { %1960 = vmatprep.subr.bf16.mxu1 %v2107_v9  ;;  %v2123_v28 = vld [vmem:[#allocation5 + $0xc8] sm:$0xff]   ;;  %v2127_v34 = vld [vmem:[#allocation5 + $0xc0] sm:$0xff]   ;;  %v2130_v56 = vld [vmem:[#allocation5 + $0x178] sm:$0xff]  }
  0x29   :  { %v2124_v29 = vld [vmem:[#allocation5 + $0x8] sm:$0xff]   ;;  %v2128_v35 = vld [vmem:[#allocation5] sm:$0xff]   ;;  %v2131_v61 = vld [vmem:[#allocation5 + $0x1f8] sm:$0xff]  }
  0x2a   :  { %1939 = vmatpush3.bf16.msra.mxu0 %v2108_v10  ;;  %v2125_v30 = vld [vmem:[#allocation5 + $0x88] sm:$0xff]   ;;  %v2129_v36 = vld [vmem:[#allocation5 + $0x80] sm:$0xff]   ;;  %v2132_v8 = vld [vmem:[#allocation5 + $0x138] sm:$0xff]  }
  0x2b   :  { %1961 = vmatpush3.bf16.msra.mxu1 %v2109_v11  ;;  %1940 = vmatprep.subr.bf16.mxu0 %v2110_v12  ;;  %v44_v38 = vld [vmem:[#allocation2] sm:$0xff]  ;;  %v2133_v9 = vld [vmem:[#allocation5 + $0x1b8] sm:$0xff]   ;;  %v2151_v31 = vld [vmem:[#allocation5 + $0x1d0] sm:$0xff]  }
  0x2c   :  { %1962 = vmatprep.subr.bf16.mxu1 %v2111_v13  ;;  %v48_v39 = vld [vmem:[#allocation2 + $0x20] sm:$0xff]  ;;  %v2146_v26 = vld [vmem:[#allocation5 + $0x158] sm:$0xff]   ;;  %v2152_v32 = vld [vmem:[#allocation5 + $0x110] sm:$0xff]  }
  0x2d   :  { %v52_v40 = vld [vmem:[#allocation2 + $0x40] sm:$0xff]  ;;  %v108_v44 = vcombine.low %v44_v38, %v48_v39  ;;  %v109_v45 = vcombine.high %v44_v38, %v48_v39  ;;  %v2157_v38 = vld [vmem:[#allocation5 + $0x188] sm:$0xff]  }
  0x2e   :  { %1941 = vmatpush3.bf16.msra.mxu0 %v2112_v14  ;;  %v56_v41 = vld [vmem:[#allocation2 + $0x60] sm:$0xff]  ;;  %v2134_v14 = vld [vmem:[#allocation5 + $0x170] sm:$0xff]  }
  0x2f   :  { %1963 = vmatpush3.bf16.msra.mxu1 %v2113_v15  ;;  %1942 = vmatprep.subr.bf16.mxu0 %v2114_v16  ;;  %v60_v42 = vld [vmem:[#allocation2 + $0x80] sm:$0xff]  ;;  %v110_v48 = vcombine.low %v52_v40, %v56_v41  ;;  %v111_v50 = vcombine.high %v52_v40, %v56_v41  ;;  %v118_v52 = vrot.slane %v108_v44, %v2330_v37  ;;  %v2135_v15 = vld [vmem:[#allocation5 + $0x1f0] sm:$0xff]   ;;  %v45_v41 = vld [vmem:[#allocation2 + $0x8] sm:$0xff] }
  0x30   :  { %1964 = vmatprep.subr.bf16.mxu1 %v2115_v17  ;;  %v64_v43 = vld [vmem:[#allocation2 + $0xa0] sm:$0xff]  ;;  %v125_v54 = vrot.slane %v109_v45, %v2330_v37  ;;  %v2136_v16 = vld [vmem:[#allocation5 + $0x130] sm:$0xff]   ;;  %v49_v44 = vld [vmem:[#allocation2 + $0x28] sm:$0xff] }
  0x31   :  { %v68_v46 = vld [vmem:[#allocation2 + $0xc0] sm:$0xff]  ;;  %v252_v49 = vcombine.low %v60_v42, %v64_v43  ;;  %v253_v51 = vcombine.high %v60_v42, %v64_v43  ;;  %v132_v57 = vrot.slane %v110_v48, %v2330_v37  ;;  %v139_v59 = vrot.slane %v111_v50, %v2330_v37  ;;  %v2137_v17 = vld [vmem:[#allocation5 + $0x1b0] sm:$0xff]   ;;  %v53_v45 = vld [vmem:[#allocation2 + $0x48] sm:$0xff] }
  0x32   :  { %1943 = vmatpush3.bf16.msra.mxu0 %v2116_v18  ;;  %v72_v47 = vld [vmem:[#allocation2 + $0xe0] sm:$0xff]  ;;  %v2138_v18 = vld [vmem:[#allocation5 + $0x168] sm:$0xff]   ;;  %v144_v50 = vcombine.low %v45_v41, %v49_v44 }
  0x33   :  { %1965 = vmatpush3.bf16.msra.mxu1 %v2117_v19  ;;  %1944 = vmatprep.subr.bf16.mxu0 %v2118_v20  ;;  %v254_v53 = vcombine.low %v68_v46, %v72_v47  ;;  %v255_v55 = vcombine.high %v68_v46, %v72_v47  ;;  %v262_v58 = vrot.slane %v252_v49, %v2330_v37  ;;  %v2139_v19 = vld [vmem:[#allocation5 + $0x1e8] sm:$0xff]   ;;  %v2144_v24 = vld [vmem:[#allocation5 + $0x120] sm:$0xff]  }
  0x34   :  { %1966 = vmatprep.subr.bf16.mxu1 %v2119_v21  ;;  %v269_v60 = vrot.slane %v253_v51, %v2330_v37  ;;  %v141_v0 = vcombine.high %v118_v52, %v132_v57  ;;  %v143_v1 = vcombine.high %v125_v54, %v139_v59  ;;  %v140_v2 = vcombine.low %v118_v52, %v132_v57  ;;  %v2140_v20 = vld [vmem:[#allocation5 + $0x128] sm:$0xff]   ;;  %v2145_v25 = vld [vmem:[#allocation5 + $0x1a0] sm:$0xff]  }
  0x35   :  { %v276_v62 = vrot.slane %v254_v53, %v2330_v37  ;;  %v283_v63 = vrot.slane %v255_v55, %v2330_v37  ;;  %v142_v3 = vcombine.low %v125_v54, %v139_v59  ;;  %v2141_v21 = vld [vmem:[#allocation5 + $0x1a8] sm:$0xff]   ;;  %v2158_v39 = vld [vmem:[#allocation5 + $0x140] sm:$0xff]   ;;  %v145_v52 = vcombine.high %v45_v41, %v49_v44 }
  0x36   :  { %1945 = vmatpush3.bf16.msra.mxu0 %v2120_v22  ;;  %v2142_v22 = vld [vmem:[#allocation5 + $0x160] sm:$0xff]   ;;  %v57_v46 = vld [vmem:[#allocation2 + $0x68] sm:$0xff]  ;;  %v154_v57 = vrot.slane %v144_v50, %v2330_v37  ;;  %v58_v50 = vld [vmem:[#allocation2 + $0x70] sm:$0xff] }
  0x37   :  { %1967 = vmatpush3.bf16.msra.mxu1 %v2121_v23  ;;  %1946 = vmatprep.subr.bf16.mxu0 %v2122_v27  ;;  %v285_v4 = vcombine.high %v262_v58, %v276_v62  ;;  %v287_v5 = vcombine.high %v269_v60, %v283_v63  ;;  %v284_v6 = vcombine.low %v262_v58, %v276_v62  ;;  %v2143_v23 = vld [vmem:[#allocation5 + $0x1e0] sm:$0xff]   ;;  %v2147_v27 = vld [vmem:[#allocation5 + $0x1d8] sm:$0xff]   ;;  %v61_v47 = vld [vmem:[#allocation2 + $0x88] sm:$0xff] }
  0x38   :  { %1968 = vmatprep.subr.bf16.mxu1 %v2123_v28  ;;  %v286_v7 = vcombine.low %v269_v60, %v283_v63  ;;  %v2148_v28 = vld [vmem:[#allocation5 + $0x118] sm:$0xff]   ;;  %v2159_v40 = vld [vmem:[#allocation5 + $0x1c0] sm:$0xff]   ;;  %v65_v48 = vld [vmem:[#allocation2 + $0xa8] sm:$0xff]  ;;  %v146_v51 = vcombine.low %v53_v45, %v57_v46  ;;  %v147_v53 = vcombine.high %v53_v45, %v57_v46  ;;  %v161_v62 = vrot.slane %v145_v52, %v2330_v37 }
  0x39   :  { %v429_v10 = vpack.c.bf16 %v285_v4, %v141_v0  ;;  %v431_v11 = vpack.c.bf16 %v287_v5, %v143_v1  ;;  %v428_v12 = vpack.c.bf16 %v284_v6, %v140_v2  ;;  %v2160_v42 = vld [vmem:[#allocation5 + $0x100] sm:$0xff]   ;;  %v69_v49 = vld [vmem:[#allocation2 + $0xc8] sm:$0xff]  ;;  %v288_v55 = vcombine.low %v61_v47, %v65_v48  ;;  %v2162_v60 = vld [vmem:[#allocation5 + $0x278] sm:$0xff]  }
  0x3a   :  { %1947 = vmatpush3.bf16.msra.mxu0 %v2124_v29  ;;  %v430_v13 = vpack.c.bf16 %v286_v7, %v142_v3  ;;  %v2149_v29 = vld [vmem:[#allocation5 + $0x198] sm:$0xff]   ;;  %v2161_v43 = vld [vmem:[#allocation5 + $0x180] sm:$0xff]   ;;  %v73_v54 = vld [vmem:[#allocation2 + $0xe8] sm:$0xff]  ;;  %v168_v58 = vrot.slane %v146_v51, %v2330_v37  ;;  %v175_v63 = vrot.slane %v147_v53, %v2330_v37 }
  0x3b   :  { %1969 = vmatpush3.bf16.msra.mxu1 %v2125_v30  ;;  %1948 = vmatprep.subr.bf16.mxu0 %v2126_v33  ;;  %v2150_v30 = vld [vmem:[#allocation5 + $0x150] sm:$0xff]   ;;  %v290_v59 = vcombine.low %v69_v49, %v73_v54  ;;  %v291_v0 = vcombine.high %v69_v49, %v73_v54  ;;  %v2163_v1 = vld [vmem:[#allocation5 + $0x2f8] sm:$0xff]   ;;  %v2187_v41 = vld [vmem:[#allocation5 + $0x2c8] sm:$0xff]  }
  0x3c   :  { %1970 = vmatprep.subr.bf16.mxu1 %v2127_v34  ;;  %1487 = vmatprep.mubr.bf16.mxu0 %v429_v10  ;;  %v2153_v33 = vld [vmem:[#allocation5 + $0x190] sm:$0xff]   ;;  %v2154_v34 = vld [vmem:[#allocation5 + $0x148] sm:$0xff]   ;;  %v177_v2 = vcombine.high %v154_v57, %v168_v58  ;;  %v176_v5 = vcombine.low %v154_v57, %v168_v58  ;;  %v179_v6 = vcombine.high %v161_v62, %v175_v63  ;;  %v2190_v44 = vld [vmem:[#allocation5 + $0x240] sm:$0xff]  }
  0x3d   :  { %1528 = vmatprep.mubr.bf16.mxu1 %v431_v11  ;;  %v312_v3 = vrot.slane %v290_v59, %v2330_v37  ;;  %v319_v7 = vrot.slane %v291_v0, %v2330_v37  ;;  %v2164_v11 = vld [vmem:[#allocation5 + $0x238] sm:$0xff]   ;;  %v2191_v45 = vld [vmem:[#allocation5 + $0x2c0] sm:$0xff]   ;;  %v46_v46 = vld [vmem:[#allocation2 + $0x10] sm:$0xff] }
  0x3e   :  { %1949 = vmatpush3.bf16.msra.mxu0 %v2128_v35  ;;  %v2155_v35 = vld [vmem:[#allocation5 + $0x1c8] sm:$0xff]   ;;  %v54_v49 = vld [vmem:[#allocation2 + $0x50] sm:$0xff]  ;;  %v2193_v59 = vld [vmem:[#allocation5 + $0x280] sm:$0xff]  }
  0x3f   :  { %1971 = vmatpush3.bf16.msra.mxu1 %v2129_v36  ;;  %1978 = vmatprep.subr.bf16.mxu0 %v2130_v56  ;;  %v2156_v36 = vld [vmem:[#allocation5 + $0x108] sm:$0xff]   ;;  %v289_v56 = vcombine.high %v61_v47, %v65_v48  ;;  %v50_v47 = vld [vmem:[#allocation2 + $0x30] sm:$0xff]  ;;  %v2192_v48 = vld [vmem:[#allocation5 + $0x200] sm:$0xff]   ;;  %v182_v57 = vcombine.low %v54_v49, %v58_v50  ;;  %v183_v58 = vcombine.high %v54_v49, %v58_v50 }
  0x40   :  { %2000 = vmatprep.subr.bf16.mxu1 %v2131_v61  ;;  %v298_v61 = vrot.slane %v288_v55, %v2330_v37  ;;  %v62_v51 = vld [vmem:[#allocation2 + $0x90] sm:$0xff]  ;;  %v180_v52 = vcombine.low %v46_v46, %v50_v47  ;;  %v181_v53 = vcombine.high %v46_v46, %v50_v47  ;;  %v71_v47 = vld [vmem:[#allocation2 + $0xd8] sm:$0xff] }
  0x41   :  { %1488 = vmatmul.mubr.bf16.vlgmr.msra.gmra.mxu0 %v428_v12  ;;  %v305_v4 = vrot.slane %v289_v56, %v2330_v37  ;;  %v66_v54 = vld [vmem:[#allocation2 + $0xb0] sm:$0xff]  ;;  %v204_v0 = vrot.slane %v182_v57, %v2330_v37 }
  0x42   :  { %1529 = vmatmul.mubr.bf16.vlgmr.msra.gmra.mxu1 %v430_v13  ;;  %1979 = vmatpush3.bf16.msra.mxu0 %v2132_v8  ;;  %v178_v8 = vcombine.low %v161_v62, %v175_v63  ;;  %v320_v10 = vcombine.low %v298_v61, %v312_v3  ;;  %v70_v55 = vld [vmem:[#allocation2 + $0xd0] sm:$0xff]  ;;  %v197_v63 = vrot.slane %v181_v53, %v2330_v37  ;;  %v2212_v53 = vld [vmem:[#allocation5 + $0x348] sm:$0xff]  }
  0x43   :  { %2001 = vmatpush3.bf16.msra.mxu1 %v2133_v9  ;;  %1980 = vmatprep.subr.bf16.mxu0 %v2134_v14  ;;  %v321_v9 = vcombine.high %v298_v61, %v312_v3  ;;  %v323_v12 = vcombine.high %v305_v4, %v319_v7  ;;  %v322_v13 = vcombine.low %v305_v4, %v319_v7  ;;  %v2165_v14 = vld [vmem:[#allocation5 + $0x2b8] sm:$0xff]   ;;  %v74_v56 = vld [vmem:[#allocation2 + $0xf0] sm:$0xff] }
  0x44   :  { %2002 = vmatprep.subr.bf16.mxu1 %v2135_v15  ;;  %v324_v61 = vcombine.low %v62_v51, %v66_v54  ;;  %v326_v62 = vcombine.low %v70_v55, %v74_v56  ;;  %v2194_v3 = vld [vmem:[#allocation5 + $0x378] sm:$0xff]  }
  0x45   :  { %v433_v15 = vpack.c.bf16 %v321_v9, %v177_v2  ;;  %v325_v2 = vcombine.high %v62_v51, %v66_v54 }
  0x46   :  { %1981 = vmatpush3.bf16.msra.mxu0 %v2136_v16  ;;  %v432_v16 = vpack.c.bf16 %v320_v10, %v176_v5  ;;  %v334_v4 = vrot.slane %v324_v61, %v2330_v37  ;;  %v348_v5 = vrot.slane %v326_v62, %v2330_v37 }
  0x47   :  { %2003 = vmatpush3.bf16.msra.mxu1 %v2137_v17  ;;  %1982 = vmatprep.subr.bf16.mxu0 %v2138_v18  ;;  %v2166_v17 = vld [vmem:[#allocation5 + $0x270] sm:$0xff]   ;;  %v435_v18 = vpack.c.bf16 %v323_v12, %v179_v6  ;;  %v327_v6 = vcombine.high %v70_v55, %v74_v56  ;;  %v341_v9 = vrot.slane %v325_v2, %v2330_v37 }
  0x48   :  { %2004 = vmatprep.subr.bf16.mxu1 %v2139_v19  ;;  %v434_v19 = vpack.c.bf16 %v322_v13, %v178_v8  ;;  %1569 = vmatprep.mubr.bf16.mxu0 %v433_v15  ;;  %v356_v13 = vcombine.low %v334_v4, %v348_v5 }
  0x49   :  { %1610 = vmatprep.mubr.bf16.mxu1 %v435_v18  ;;  %v355_v12 = vrot.slane %v327_v6, %v2330_v37 }
  0x4a   :  { %1983 = vmatpush3.bf16.msra.mxu0 %v2140_v20  ;;  %v2167_v20 = vld [vmem:[#allocation5 + $0x2f0] sm:$0xff]  }
  0x4b   :  { %2005 = vmatpush3.bf16.msra.mxu1 %v2141_v21  ;;  %1984 = vmatprep.subr.bf16.mxu0 %v2142_v22  ;;  %v2168_v21 = vld [vmem:[#allocation5 + $0x230] sm:$0xff]   ;;  %v358_v18 = vcombine.low %v341_v9, %v355_v12 }
  0x4c   :  { %2006 = vmatprep.subr.bf16.mxu1 %v2143_v23  ;;  %v2169_v22 = vld [vmem:[#allocation5 + $0x2b0] sm:$0xff]   ;;  %v2170_v23 = vld [vmem:[#allocation5 + $0x268] sm:$0xff]  }
  0x4e   :  { %1985 = vmatpush3.bf16.msra.mxu0 %v2144_v24  ;;  %v2171_v24 = vld [vmem:[#allocation5 + $0x2e8] sm:$0xff]  }
  0x4f   :  { %2007 = vmatpush3.bf16.msra.mxu1 %v2145_v25  ;;  %1986 = vmatprep.subr.bf16.mxu0 %v2146_v26  ;;  %v2172_v25 = vld [vmem:[#allocation5 + $0x228] sm:$0xff]  }
  0x50   :  { %2008 = vmatprep.subr.bf16.mxu1 %v2147_v27  ;;  %v2173_v26 = vld [vmem:[#allocation5 + $0x2a8] sm:$0xff]   ;;  %v2174_v27 = vld [vmem:[#allocation5 + $0x260] sm:$0xff]  }
  0x52   :  { %1987 = vmatpush3.bf16.msra.mxu0 %v2148_v28  ;;  %v2175_v28 = vld [vmem:[#allocation5 + $0x2e0] sm:$0xff]  }
  0x53   :  { %2009 = vmatpush3.bf16.msra.mxu1 %v2149_v29  ;;  %1988 = vmatprep.subr.bf16.mxu0 %v2150_v30  ;;  %v2176_v29 = vld [vmem:[#allocation5 + $0x220] sm:$0xff]  }
  0x54   :  { %2010 = vmatprep.subr.bf16.mxu1 %v2151_v31  ;;  %v2177_v30 = vld [vmem:[#allocation5 + $0x2a0] sm:$0xff]   ;;  %v2178_v31 = vld [vmem:[#allocation5 + $0x258] sm:$0xff]  }
  0x56   :  { %1989 = vmatpush3.bf16.msra.mxu0 %v2152_v32  ;;  %v2179_v32 = vld [vmem:[#allocation5 + $0x2d8] sm:$0xff]  }
  0x57   :  { %2011 = vmatpush3.bf16.msra.mxu1 %v2153_v33  ;;  %1990 = vmatprep.subr.bf16.mxu0 %v2154_v34  ;;  %v2180_v33 = vld [vmem:[#allocation5 + $0x218] sm:$0xff]  }
  0x58   :  { %2012 = vmatprep.subr.bf16.mxu1 %v2155_v35  ;;  %v2181_v34 = vld [vmem:[#allocation5 + $0x298] sm:$0xff]   ;;  %v2182_v35 = vld [vmem:[#allocation5 + $0x250] sm:$0xff]  }
  0x5a   :  { %1991 = vmatpush3.bf16.msra.mxu0 %v2156_v36  ;;  %v2183_v36 = vld [vmem:[#allocation5 + $0x2d0] sm:$0xff]  }
  0x5b   :  { %2013 = vmatpush3.bf16.msra.mxu1 %v2157_v38  ;;  %1992 = vmatprep.subr.bf16.mxu0 %v2158_v39  ;;  %v2184_v38 = vld [vmem:[#allocation5 + $0x210] sm:$0xff]  }
  0x5c   :  { %2014 = vmatprep.subr.bf16.mxu1 %v2159_v40  ;;  %v2185_v39 = vld [vmem:[#allocation5 + $0x290] sm:$0xff]   ;;  %v2186_v40 = vld [vmem:[#allocation5 + $0x248] sm:$0xff]  }
  0x5e   :  { %1993 = vmatpush3.bf16.msra.mxu0 %v2160_v42  ;;  %v2188_v42 = vld [vmem:[#allocation5 + $0x208] sm:$0xff]  }
  0x5f   :  { %2015 = vmatpush3.bf16.msra.mxu1 %v2161_v43  ;;  %2022 = vmatprep.subr.bf16.mxu0 %v2162_v60  ;;  %v2189_v43 = vld [vmem:[#allocation5 + $0x288] sm:$0xff]   ;;  %v190_v60 = vrot.slane %v180_v52, %v2330_v37 }
  0x60   :  { %2044 = vmatprep.subr.bf16.mxu1 %v2163_v1  ;;  %v211_v1 = vrot.slane %v183_v58, %v2330_v37  ;;  %v2211_v58 = vld [vmem:[#allocation5 + $0x390] sm:$0xff]  }
  0x61   :  { %1570 = vmatmul.mubr.bf16.vlgmr.msra.gmra.mxu0 %v432_v16  ;;  %v213_v7 = vcombine.high %v190_v60, %v204_v0  ;;  %v212_v10 = vcombine.low %v190_v60, %v204_v0  ;;  %v359_v16 = vcombine.high %v341_v9, %v355_v12  ;;  %v2216_v12 = vld [vmem:[#allocation5 + $0x300] sm:$0xff]  }
  0x62   :  { %1611 = vmatmul.mubr.bf16.vlgmr.msra.gmra.mxu1 %v434_v19  ;;  %2023 = vmatpush3.bf16.msra.mxu0 %v2164_v11  ;;  %v215_v8 = vcombine.high %v197_v63, %v211_v1  ;;  %v357_v11 = vcombine.high %v334_v4, %v348_v5  ;;  %v2300_v19 = vmov 0   ;;  %v2215_v4 = vld [vmem:[#allocation5 + $0x340] sm:$0xff]  }
  0x63   :  { %2045 = vmatpush3.bf16.msra.mxu1 %v2165_v14  ;;  %2024 = vmatprep.subr.bf16.mxu0 %v2166_v17  ;;  %v214_v14 = vcombine.low %v197_v63, %v211_v1  ;;  %v436_v17 = vpack.c.bf16 %v356_v13, %v212_v10  ;;  %v2213_v1 = vld [vmem:[#allocation5 + $0x308] sm:$0xff]  }
  0x64   :  { %2046 = vmatprep.subr.bf16.mxu1 %v2167_v20  ;;  %v437_v15 = vpack.c.bf16 %v357_v11, %v213_v7  ;;  %v2195_v20 = vld [vmem:[#allocation5 + $0x338] sm:$0xff]   ;;  %v2214_v7 = vld [vmem:[#allocation5 + $0x388] sm:$0xff]  }
  0x66   :  { %2025 = vmatpush3.bf16.msra.mxu0 %v2168_v21  ;;  %v2197_v21 = vld [vmem:[#allocation5 + $0x370] sm:$0xff]   ;;  %1651 = vmatprep.mubr.bf16.mxu0 %v437_v15  ;;  %v2219_v15 = vld [vmem:[#allocation5 + $0x3d8] sm:$0xff]  }
  0x67   :  { %2047 = vmatpush3.bf16.msra.mxu1 %v2169_v22  ;;  %2026 = vmatprep.subr.bf16.mxu0 %v2170_v23  ;;  %v439_v22 = vpack.c.bf16 %v359_v16, %v215_v8  ;;  %v438_v23 = vpack.c.bf16 %v358_v18, %v214_v14  ;;  %v2218_v14 = vld [vmem:[#allocation5 + $0x3e0] sm:$0xff]   ;;  %v2220_v16 = vld [vmem:[#allocation5 + $0x3d0] sm:$0xff]  }
  0x68   :  { %2048 = vmatprep.subr.bf16.mxu1 %v2171_v24  ;;  %v2196_v24 = vld [vmem:[#allocation5 + $0x3b8] sm:$0xff]  }
  0x69   :  { %1692 = vmatprep.mubr.bf16.mxu1 %v439_v22 }
  0x6a   :  { %2027 = vmatpush3.bf16.msra.mxu0 %v2172_v25  ;;  %v2198_v25 = vld [vmem:[#allocation5 + $0x330] sm:$0xff]  }
  0x6b   :  { %2049 = vmatpush3.bf16.msra.mxu1 %v2173_v26  ;;  %2028 = vmatprep.subr.bf16.mxu0 %v2174_v27  ;;  %v2200_v26 = vld [vmem:[#allocation5 + $0x368] sm:$0xff]   ;;  %v2199_v27 = vld [vmem:[#allocation5 + $0x3b0] sm:$0xff]  }
  0x6c   :  { %2050 = vmatprep.subr.bf16.mxu1 %v2175_v28  ;;  %v2201_v28 = vld [vmem:[#allocation5 + $0x328] sm:$0xff]  }
  0x6e   :  { %2029 = vmatpush3.bf16.msra.mxu0 %v2176_v29  ;;  %v2203_v29 = vld [vmem:[#allocation5 + $0x360] sm:$0xff]  }
  0x6f   :  { %2051 = vmatpush3.bf16.msra.mxu1 %v2177_v30  ;;  %2030 = vmatprep.subr.bf16.mxu0 %v2178_v31  ;;  %v2202_v30 = vld [vmem:[#allocation5 + $0x3a8] sm:$0xff]   ;;  %v2204_v31 = vld [vmem:[#allocation5 + $0x320] sm:$0xff]  }
  0x70   :  { %2052 = vmatprep.subr.bf16.mxu1 %v2179_v32  ;;  %v2206_v32 = vld [vmem:[#allocation5 + $0x358] sm:$0xff]  }
  0x72   :  { %2031 = vmatpush3.bf16.msra.mxu0 %v2180_v33  ;;  %v2205_v33 = vld [vmem:[#allocation5 + $0x3a0] sm:$0xff]  }
  0x73   :  { %2053 = vmatpush3.bf16.msra.mxu1 %v2181_v34  ;;  %2032 = vmatprep.subr.bf16.mxu0 %v2182_v35  ;;  %v2207_v34 = vld [vmem:[#allocation5 + $0x318] sm:$0xff]  }
  0x74   :  { %2054 = vmatprep.subr.bf16.mxu1 %v2183_v36  ;;  %v2208_v35 = vld [vmem:[#allocation5 + $0x398] sm:$0xff]   ;;  %v2209_v36 = vld [vmem:[#allocation5 + $0x350] sm:$0xff]  }
  0x76   :  { %2033 = vmatpush3.bf16.msra.mxu0 %v2184_v38  ;;  %v2210_v38 = vld [vmem:[#allocation5 + $0x310] sm:$0xff]  }
  0x77   :  { %2055 = vmatpush3.bf16.msra.mxu1 %v2185_v39  ;;  %2034 = vmatprep.subr.bf16.mxu0 %v2186_v40  ;;  %v47_v39 = vld [vmem:[#allocation2 + $0x18] sm:$0xff] }
  0x78   :  { %2056 = vmatprep.subr.bf16.mxu1 %v2187_v41  ;;  %v51_v40 = vld [vmem:[#allocation2 + $0x38] sm:$0xff] }
  0x79   :  { %v55_v41 = vld [vmem:[#allocation2 + $0x58] sm:$0xff]  ;;  %v217_v46 = vcombine.high %v47_v39, %v51_v40 }
  0x7a   :  { %2035 = vmatpush3.bf16.msra.mxu0 %v2188_v42  ;;  %v59_v42 = vld [vmem:[#allocation2 + $0x78] sm:$0xff] }
  0x7b   :  { %2057 = vmatpush3.bf16.msra.mxu1 %v2189_v43  ;;  %2036 = vmatprep.subr.bf16.mxu0 %v2190_v44  ;;  %v63_v43 = vld [vmem:[#allocation2 + $0x98] sm:$0xff]  ;;  %v218_v49 = vcombine.low %v55_v41, %v59_v42  ;;  %v219_v50 = vcombine.high %v55_v41, %v59_v42  ;;  %v233_v57 = vrot.slane %v217_v46, %v2330_v37 }
  0x7c   :  { %2058 = vmatprep.subr.bf16.mxu1 %v2191_v45  ;;  %v67_v44 = vld [vmem:[#allocation2 + $0xb8] sm:$0xff]  ;;  %v216_v45 = vcombine.low %v47_v39, %v51_v40  ;;  %v1807_v40 = vld [vmem:[%s2387_s2] ss:$0 sm:$0xff] }
  0x7d   :  { %v360_v51 = vcombine.low %v63_v43, %v67_v44  ;;  %v361_v52 = vcombine.high %v63_v43, %v67_v44  ;;  %v247_v61 = vrot.slane %v219_v50, %v2330_v37 }
  0x7e   :  { %2037 = vmatpush3.bf16.msra.mxu0 %v2192_v48  ;;  %v75_v48 = vld [vmem:[#allocation2 + $0xf8] sm:$0xff]  ;;  %v226_v54 = vrot.slane %v216_v45, %v2330_v37 }
  0x7f   :  { %2059 = vmatpush3.bf16.msra.mxu1 %v2193_v59  ;;  %2066 = vmatprep.subr.bf16.mxu0 %v2194_v3  ;;  %v362_v55 = vcombine.low %v71_v47, %v75_v48  ;;  %v363_v56 = vcombine.high %v71_v47, %v75_v48  ;;  %v240_v59 = vrot.slane %v218_v49, %v2330_v37 }
  0x80   :  { %1742 = vmatprep.subr.bf16.mxu1 %v2300_v19  ;;  %v370_v60 = vrot.slane %v360_v51, %v2330_v37  ;;  %v377_v62 = vrot.slane %v361_v52, %v2330_v37  ;;  %v251_v3 = vcombine.high %v233_v57, %v247_v61  ;;  %v250_v18 = vcombine.low %v233_v57, %v247_v61 }
  0x81   :  { %1652 = vmatmul.mubr.bf16.vlgmr.msra.gmra.mxu0 %v436_v17  ;;  %v384_v63 = vrot.slane %v362_v55, %v2330_v37  ;;  %v391_v0 = vrot.slane %v363_v56, %v2330_v37  ;;  %v249_v2 = vcombine.high %v226_v54, %v240_v59  ;;  %v248_v9 = vcombine.low %v226_v54, %v240_v59  ;;  %v2217_v37 = vld [vmem:[#allocation5 + $0x380] sm:$0xff]   ;;  %v2221_v17 = vld [vmem:[#allocation5 + $0x3c8] sm:$0xff]  }
  0x82   :  { %2067 = vmatpush3.bf16.msra.mxu0 %v2195_v20  ;;  %1693 = vmatmul.mubr.bf16.vlgmr.msra.gmra.mxu1 %v438_v23 }
  0x83   :  { %2068 = vmatprep.subr.bf16.mxu0 %v2197_v21  ;;  %1743 = vmatpush1.bf16.msra.mxu1 %v2196_v24  ;;  %v393_v5 = vcombine.high %v370_v60, %v384_v63  ;;  %v395_v6 = vcombine.high %v377_v62, %v391_v0  ;;  %v392_v10 = vcombine.low %v370_v60, %v384_v63  ;;  %v2222_v21 = vld [vmem:[#allocation5 + $0x3c0] sm:$0xff]  }
  0x84   :  { %1744 = vmatprep.subr.bf16.mxu1 %v2300_v19  ;;  %v394_v20 = vcombine.low %v377_v62, %v391_v0 }
  0x85   :  { %v441_v8 = vpack.c.bf16 %v393_v5, %v249_v2  ;;  %v443_v11 = vpack.c.bf16 %v395_v6, %v251_v3  ;;  %v440_v13 = vpack.c.bf16 %v392_v10, %v248_v9 }
  0x86   :  { %2069 = vmatpush3.bf16.msra.mxu0 %v2198_v25  ;;  %v442_v22 = vpack.c.bf16 %v394_v20, %v250_v18 }
  0x87   :  { %2070 = vmatprep.subr.bf16.mxu0 %v2200_v26  ;;  %1745 = vmatpush1.bf16.msra.mxu1 %v2199_v27 }
  0x88   :  { %1746 = vmatprep.subr.bf16.mxu1 %v2300_v19  ;;  %1733 = vmatprep.mubr.bf16.mxu0 %v441_v8 }
  0x89   :  { %1933 = vmatprep.mubr.msk.bf16.mxu1 %vm1451_vm0, %v443_v11 }
  0x8a   :  { %2071 = vmatpush3.bf16.msra.mxu0 %v2201_v28 }
  0x8b   :  { %2072 = vmatprep.subr.bf16.mxu0 %v2203_v29  ;;  %1747 = vmatpush1.bf16.msra.mxu1 %v2202_v30 }
  0x8c   :  { %1748 = vmatprep.subr.bf16.mxu1 %v2300_v19 }
  0x8e   :  { %2073 = vmatpush3.bf16.msra.mxu0 %v2204_v31 }
  0x8f   :  { %2074 = vmatprep.subr.bf16.mxu0 %v2206_v32  ;;  %1749 = vmatpush1.bf16.msra.mxu1 %v2205_v33 }
  0x90   :  { %1750 = vmatprep.subr.bf16.mxu1 %v2300_v19 }
  0x92   :  { %2075 = vmatpush3.bf16.msra.mxu0 %v2207_v34 }
  0x93   :  { %2076 = vmatprep.subr.bf16.mxu0 %v2209_v36  ;;  %1751 = vmatpush1.bf16.msra.mxu1 %v2208_v35 }
  0x94   :  { %1752 = vmatprep.subr.bf16.mxu1 %v2300_v19 }
  0x96   :  { %2077 = vmatpush3.bf16.msra.mxu0 %v2210_v38 }
  0x97   :  { %2078 = vmatprep.subr.bf16.mxu0 %v2212_v53  ;;  %1753 = vmatpush1.bf16.msra.mxu1 %v2211_v58 }
  0x98   :  { %1754 = vmatprep.subr.bf16.mxu1 %v2300_v19 }
  0x9a   :  { %2079 = vmatpush3.bf16.msra.mxu0 %v2213_v1 }
  0x9b   :  { %2080 = vmatprep.subr.bf16.mxu0 %v2215_v4  ;;  %1755 = vmatpush1.bf16.msra.mxu1 %v2214_v7 }
  0x9c   :  { %1756 = vmatprep.subr.bf16.mxu1 %v2300_v19 }
  0x9e   :  { %2081 = vmatpush3.bf16.msra.mxu0 %v2216_v12 }
  0x9f   :  { %1757 = vmatpush1.bf16.msra.mxu1 %v2217_v37 }
  0xa0   :  { %1764 = vmatprep.subr.bf16.mxu1 %v2300_v19 }
  0xa1   :  { %1734 = vmatmul.mubr.bf16.vlgmr.msra.gmra.mxu0 %v440_v13 }
  0xa3   :  { %1765 = vmatpush2.bf16.msra.mxu1 %v2218_v14 }
  0xa4   :  { %1766 = vmatprep.subr.bf16.mxu1 %v2300_v19 }
  0xa7   :  { %1767 = vmatpush2.bf16.msra.mxu1 %v2219_v15 }
  0xa8   :  { %1768 = vmatprep.subr.bf16.mxu1 %v2300_v19 }
  0xab   :  { %1769 = vmatpush2.bf16.msra.mxu1 %v2220_v16 }
  0xac   :  { %1770 = vmatprep.subr.bf16.mxu1 %v2300_v19 }
  0xaf   :  { %1771 = vmatpush2.bf16.msra.mxu1 %v2221_v17 }
  0xb0   :  { %1772 = vmatprep.subr.bf16.mxu1 %v2300_v19 }
  0xb3   :  { %1773 = vmatpush2.bf16.msra.mxu1 %v2222_v21 }
  0xb6   :  { %1775 = vmatmul.mubr.bf16.vlgmr.msra.gmra.mxu1 %v442_v22 }
 0x101   :  { %v1950_v23 = vpop.f32.mrf.mxu0 }
 0x102   :  { %v1972_v27 = vpop.f32.mrf.mxu1 }
 0x103   :  { %v1951_v24 = vpop.f32.mrf.mxu0 }
 0x104   :  { %v1973_v29 = vpop.f32.mrf.mxu1  ;;  %v1952_v19 = vadd.f32 %v1951_v24, %v1950_v23 }
 0x105   :  { %v1953_v25 = vpop.f32.mrf.mxu0  ;;  %v1974_v47 = vadd.f32 %v1973_v29, %v1972_v27 }
 0x106   :  { %v1975_v31 = vpop.f32.mrf.mxu1  ;;  %v1490_v43 = vadd.f32 %v1952_v19, %v1807_v40 }
 0x107   :  { %v1954_v26 = vpop.f32.mrf.mxu0 }
 0x108   :  { %v1976_v33 = vpop.f32.mrf.mxu1  ;;  %v1955_v44 = vadd.f32 %v1954_v26, %v1953_v25  ;;  %v1531_v51 = vadd.f32 %v1974_v47, %v1490_v43 }
 0x109   :  { %v1977_v53 = vadd.f32 %v1976_v33, %v1975_v31 }
 0x10a   :  { %v1493_v52 = vadd.f32 %v1955_v44, %v1807_v40 }
 0x10c   :  { %v1534_v58 = vadd.f32 %v1977_v53, %v1493_v52 }
 0x121   :  { %v1994_v28 = vpop.f32.mrf.mxu0 }
 0x122   :  { %v2016_v35 = vpop.f32.mrf.mxu1 }
 0x123   :  { %v1995_v30 = vpop.f32.mrf.mxu0 }
 0x124   :  { %v2017_v38 = vpop.f32.mrf.mxu1  ;;  %v1996_v48 = vadd.f32 %v1995_v30, %v1994_v28 }
 0x125   :  { %v1997_v32 = vpop.f32.mrf.mxu0  ;;  %v2018_v59 = vadd.f32 %v2017_v38, %v2016_v35 }
 0x126   :  { %v2019_v41 = vpop.f32.mrf.mxu1  ;;  %v1572_v54 = vadd.f32 %v1996_v48, %v1531_v51 }
 0x127   :  { %v1998_v34 = vpop.f32.mrf.mxu0 }
 0x128   :  { %v2020_v45 = vpop.f32.mrf.mxu1  ;;  %v1999_v55 = vadd.f32 %v1998_v34, %v1997_v32  ;;  %v1613_v61 = vadd.f32 %v2018_v59, %v1572_v54 }
 0x129   :  { %v2021_v1 = vadd.f32 %v2020_v45, %v2019_v41 }
 0x12a   :  { %v1575_v62 = vadd.f32 %v1999_v55, %v1534_v58 }
 0x12c   :  { %v1616_v4 = vadd.f32 %v2021_v1, %v1575_v62 }
 0x141   :  { %v2038_v36 = vpop.f32.mrf.mxu0 }
 0x142   :  { %v2060_v49 = vpop.f32.mrf.mxu1 }
 0x143   :  { %v2039_v39 = vpop.f32.mrf.mxu0 }
 0x144   :  { %v2061_v56 = vpop.f32.mrf.mxu1  ;;  %v2040_v60 = vadd.f32 %v2039_v39, %v2038_v36 }
 0x145   :  { %v2041_v42 = vpop.f32.mrf.mxu0  ;;  %v2062_v5 = vadd.f32 %v2061_v56, %v2060_v49 }
 0x146   :  { %v2063_v63 = vpop.f32.mrf.mxu1  ;;  %v1654_v2 = vadd.f32 %v2040_v60, %v1613_v61 }
 0x147   :  { %v2042_v46 = vpop.f32.mrf.mxu0 }
 0x148   :  { %v2043_v3 = vadd.f32 %v2042_v46, %v2041_v42  ;;  %v2064_v7 = vpop.f32.mrf.mxu1  ;;  %v1695_v9 = vadd.f32 %v2062_v5, %v1654_v2 }
 0x149   :  { %v2065_v11 = vadd.f32 %v2064_v7, %v2063_v63 }
 0x14a   :  { %v1657_v10 = vadd.f32 %v2043_v3, %v1616_v4 }
 0x14c   :  { %v1698_v14 = vadd.f32 %v2065_v11, %v1657_v10 }
 0x161   :  { %v2082_v50 = vpop.f32.mrf.mxu0 }
 0x163   :  { %v2083_v57 = vpop.f32.mrf.mxu0 }
 0x164   :  { %v2084_v6 = vadd.f32 %v2083_v57, %v2082_v50 }
 0x165   :  { %v2085_v0 = vpop.f32.mrf.mxu0 }
 0x166   :  { %v1736_v37 = vadd.f32 %v2084_v6, %v1695_v9 }
 0x167   :  { %v2086_v8 = vpop.f32.mrf.mxu0 }
 0x168   :  { %v2087_v12 = vadd.f32 %v2086_v8, %v2085_v0 }
 0x16a   :  { %v1739_v18 = vadd.f32 %v2087_v12, %v1698_v14 }
 0x176   :  { %v1776_v13 = vpop.f32.mrf.mxu1 }
 0x177   :  { %v1777_v15 = vadd.f32 %v1776_v13, %v1736_v37 }
 0x178   :  { %v1778_v16 = vpop.f32.mrf.mxu1 }
 0x179   :  { %v1783_v17 = vmul.f32 1.442695, %v1777_v15 }
 0x17a   :  { %v1779_v20 = vpop.f32.mrf.mxu1 }
 0x17b   :  { %2223 = vpow2.f32 %v1783_v17  ;;  %v1780_v21 = vadd.f32 %v1779_v20, %v1739_v18 }
 0x17c   :  { %v1781_v22 = vpop.f32.mrf.mxu1 }
 0x17d   :  { %v1785_v23 = vmul.f32 1.442695, %v1780_v21 }
 0x17f   :  { %2225 = vpow2.f32 %v1785_v23 }
 0x188   :  { %v2224_v24 = vpop.eup %2223 }
 0x189   :  { %1787 = vst [vmem:[#allocation7] sm:$0xff] %v2224_v24 }
 0x18c   :  { %v2226_v25 = vpop.eup %2225 }
 0x18d   :  { %1788 = vst [vmem:[#allocation7 + $0x8] sm:$0xff] %v2226_v25 }
 0x18e   :  { %1793 = vsyncadd [#allocation4], 224  ;;  %s2301_s2 = smov [#allocation7]  }
 0x18f   :  { %s1794_s27 = sshll.u32 %s2301_s2, 4  ;;  %s1795_s27 = int_to_ptr.vmem [resolvable:$true] %s1794_s27 }
 0x190   :  { %s2267_s28 = scalar_lea.vmem %s1795_s27, 32  ;;  %s2271_s29 = scalar_lea.vmem %s1795_s27, 256 }
 0x191   :  { %p2268_p10 = scmp.ne.s32.totalorder %s1795_s27, %s2267_s28  ;;  %p2272_p11 = scmp.lt.s32.totalorder %s1795_s27, %s1795_s27 }
 0x192   :  { %p2273_p12 = scmp.lt.s32.totalorder %s2271_s29, %s2267_s28 }
 0x194   :  { %p2274_p13 = por %p2273_p12, %p2272_p11 }
 0x196   :  { %p2275_p0 = pnand %p2274_p13, %p2268_p10 }
 0x198   :  { %2278 = shalt.err (!%p2275_p0)
}
 0x199   :  { %s2302_s30 = smov 2  }
 0x19a   :  { %1800 = dma.vmem_to_hbm [thread:$0]  %s1795_s27, 32, %s2388_s3, [#allocation4], %s2295_s17, %s2295_s17, %s2302_s30  }
 0x19b   :  { %2291 = dma.done.wait [#allocation4], 256  }
 0x19c   :  { %2292 = vsyncadd [#allocation4], 4294967040 }
 0x19d   :  { %1804 = vsyncpa [#allocation3], 1 }
 0x19e   :  { %1805 = vsyncpa [#allocation6], 1 }
 0x19f   :  { %1806 = vsyncpa [#allocation4], 1 }

</bundles_post_ra>
